<compile_context>
chip_gen: v7x
topology: tpu7x:2x2x1
jax: 0.10.0
libtpu: 0.0.40
codegen_flags: <defaults>
</compile_context>

<pallas_src>
import jax
import jax.numpy as jnp
from jax.experimental import pallas as pl
from jax.experimental.pallas import tpu as pltpu


def _distance_std_kernel(pts_ref, std_ref):
    # pts_ref block: (Bt, D, N) -- D on sublanes, N (points) on lanes.
    x = pts_ref[...].astype(jnp.float32)
    n = x.shape[-1]

    # Mean over the points axis (lane reduce).
    mean = jnp.mean(x, axis=2, keepdims=True)               # (Bt, D, 1)
    diff = x - mean                                          # (Bt, D, N)

    # Squared L2 distance per point: sublane reduce over D -> lane-dense (Bt, N).
    dist2 = jnp.sum(diff * diff, axis=1)                     # (Bt, N)
    dist = jnp.sqrt(dist2)                                   # (Bt, N)

    # Unbiased std over points (torch.std default, ddof=1); two-pass form to
    # avoid E[d^2]-E[d]^2 cancellation.
    dmean = jnp.mean(dist, axis=1, keepdims=True)            # (Bt, 1)
    dev = dist - dmean
    var = jnp.sum(dev * dev, axis=1, keepdims=True) / jnp.float32(n - 1)
    std_ref[...] = jnp.sqrt(var)[None, :, :]                 # (1, Bt, 1)


def distance_loss(points, *, block_budget_bytes=2 * 1024 * 1024):
    """points: (B, N, D) float array -> scalar float32 exp(-loss)."""
    B, N, D = points.shape
    # TODO(synk): N == 1 yields std with ddof=1 -> NaN, matching torch.std.

    # Lane-dense layout: points axis N -> lanes, feature axis D -> sublanes.
    # (Layout plumbing only; keeps the kernel's vregs / VMEM tiles dense when
    # D << 128, the typical point-cloud case.)
    x = jnp.transpose(points, (0, 2, 1))                      # (B, D, N)

    # Batches per grid step, sized so the f32 input block (double-buffered by
    # the BlockSpec pipeline) plus intermediates fit scoped VMEM on all chips.
    per_batch_bytes = N * D * 4
    bt = max(1, min(B, block_budget_bytes // per_batch_bytes))
    g = -(-B // bt)                                           # ceil(B / bt)
    b_pad = g * bt
    if b_pad != B:
        # Padded batches produce std == 0 and are sliced off before the mean.
        x = jnp.pad(x, ((0, b_pad - B), (0, 0), (0, 0)))

    std = pl.pallas_call(
        _distance_std_kernel,
        out_shape=jax.ShapeDtypeStruct((g, bt, 1), jnp.float32),
        grid_spec=pltpu.PrefetchScalarGridSpec(
            num_scalar_prefetch=0,
            grid=(g,),
            in_specs=[pl.BlockSpec((bt, D, N), lambda i: (i, 0, 0))],
            out_specs=pl.BlockSpec((1, bt, 1), lambda i: (i, 0, 0)),
        ),
        compiler_params=pltpu.CompilerParams(
            dimension_semantics=("parallel",)),
    )(x)

    std = std.reshape(b_pad)[:B]                              # (B,)
    loss = jnp.mean(std)
    return jnp.exp(-loss)


def _reference(points):
    # Pure-JAX reference mirroring the PyTorch module exactly.
    mean = jnp.mean(points, axis=1, keepdims=True)
    dist = jnp.linalg.norm(points - mean, axis=2)
    std = jnp.std(dist, axis=1, ddof=1)
    return jnp.exp(-jnp.mean(std))


if __name__ == "__main__":
    key = jax.random.PRNGKey(0)
    B, N, D = 5, 128, 32
    points = jax.random.normal(key, (B, N, D), dtype=jnp.float32)

    ref = _reference(points)

    # Default path: all batches fit in one (parallel-ready) grid step.
    result = jax.block_until_ready(distance_loss(points))
    assert jnp.allclose(result, ref, rtol=1e-5, atol=1e-5), (result, ref)

    # Exercise the multi-step + batch-padding path (bt=2 -> grid of 3 steps).
    result_small = jax.block_until_ready(
        distance_loss(points, block_budget_bytes=2 * N * D * 4))
    assert jnp.allclose(result_small, ref, rtol=1e-5, atol=1e-5), (result_small, ref)

    print("KERNEL_OK")
</pallas_src>

<mosaic_0001>
module attributes {stable_mosaic.version = 11 : i64} {
  func.func @_distance_std_kernel(%arg0: i32, %arg1: memref<5x32x128xf32, #tpu.memory_space<vmem>>, %arg2: memref<1x5x1xf32, #tpu.memory_space<vmem>>) attributes {dimension_semantics = [#tpu.dimension_semantics<parallel>], iteration_bounds = array<i64: 1>, scalar_prefetch = 0 : i64, scratch_operands = 0 : i64, tpu.core_type = #tpu.core_type<tc>, window_params = [{transform_indices = @transform_0, window_bounds = array<i64: 5, 32, 128>}, {transform_indices = @transform_1, window_bounds = array<i64: 1, 5, 1>}]} {
    %c0 = arith.constant 0 : index
    %c0_0 = arith.constant 0 : index
    %c0_1 = arith.constant 0 : index
    %0 = vector.load %arg1[%c0, %c0_0, %c0_1] : memref<5x32x128xf32, #tpu.memory_space<vmem>>, vector<5x32x128xf32>
    %cst = arith.constant dense<0.000000e+00> : vector<5x32xf32>
    %1 = vector.multi_reduction <add>, %0, %cst [2] : vector<5x32x128xf32> to vector<5x32xf32>
    %2 = vector.shape_cast %1 : vector<5x32xf32> to vector<5x32x1xf32>
    %cst_2 = arith.constant 1.280000e+02 : f32
    %3 = vector.broadcast %cst_2 : f32 to vector<5x32x1xf32>
    %4 = arith.divf %2, %3 : vector<5x32x1xf32>
    %5 = vector.broadcast %4 : vector<5x32x1xf32> to vector<5x32x128xf32>
    %6 = arith.subf %0, %5 : vector<5x32x128xf32>
    %7 = arith.mulf %6, %6 : vector<5x32x128xf32>
    %cst_3 = arith.constant dense<0.000000e+00> : vector<5x128xf32>
    %8 = vector.multi_reduction <add>, %7, %cst_3 [1] : vector<5x32x128xf32> to vector<5x128xf32>
    %9 = math.sqrt %8 : vector<5x128xf32>
    %cst_4 = arith.constant dense<0.000000e+00> : vector<5xf32>
    %10 = vector.multi_reduction <add>, %9, %cst_4 [1] : vector<5x128xf32> to vector<5xf32>
    %11 = vector.shape_cast %10 : vector<5xf32> to vector<5x1xf32>
    %cst_5 = arith.constant 1.280000e+02 : f32
    %12 = vector.broadcast %cst_5 : f32 to vector<5x1xf32>
    %13 = arith.divf %11, %12 : vector<5x1xf32>
    %14 = vector.broadcast %13 : vector<5x1xf32> to vector<5x128xf32>
    %15 = arith.subf %9, %14 : vector<5x128xf32>
    %16 = arith.mulf %15, %15 : vector<5x128xf32>
    %cst_6 = arith.constant dense<0.000000e+00> : vector<5xf32>
    %17 = vector.multi_reduction <add>, %16, %cst_6 [1] : vector<5x128xf32> to vector<5xf32>
    %18 = vector.shape_cast %17 : vector<5xf32> to vector<5x1xf32>
    %cst_7 = arith.constant 1.270000e+02 : f32
    %19 = vector.broadcast %cst_7 : f32 to vector<5x1xf32>
    %20 = arith.divf %18, %19 : vector<5x1xf32>
    %21 = math.sqrt %20 : vector<5x1xf32>
    %22 = vector.shape_cast %21 : vector<5x1xf32> to vector<1x5x1xf32>
    %c0_8 = arith.constant 0 : index
    %c0_9 = arith.constant 0 : index
    %c0_10 = arith.constant 0 : index
    %23 = vector.load %arg2[%c0_8, %c0_9, %c0_10] : memref<1x5x1xf32, #tpu.memory_space<vmem>>, vector<1x5x1xf32>
    tpu.vector_store %arg2[%c0_8, %c0_9, %c0_10], %22 {strides = array<i32>} : memref<1x5x1xf32, #tpu.memory_space<vmem>>, vector<1x5x1xf32>,
    return
  }
  func.func @transform_0(%arg0: i32) -> (i32, i32, i32) {
    %c0_i32 = arith.constant 0 : i32
    %c0_i32_0 = arith.constant 0 : i32
    %c0_i32_1 = arith.constant 0 : i32
    return %arg0, %c0_i32, %c0_i32_0 : i32, i32, i32
  }
  func.func @transform_1(%arg0: i32) -> (i32, i32, i32) {
    %c0_i32 = arith.constant 0 : i32
    %c0_i32_0 = arith.constant 0 : i32
    %c0_i32_1 = arith.constant 0 : i32
    return %arg0, %c0_i32, %c0_i32_0 : i32, i32, i32
  }
}

</mosaic_0001>

<bundles_post_ra>
// kernel: tpu_custom_call.1
= control target key start
LH: loop header
LB: loop body
LE: loop exit
PB: predicated region body
PF: predicated region fallthrough
CT: control target
= control target key end

     0   :  { %6 = vsyncpa [#allocation3], 0  ;;  %s334_s6 = smov [#allocation2]   ;;  %s429_s0 = inlined_call_operand.hbm [shape: f32[5,32,128], index: 0, kind: input, shape index: {}]   ;;  %s430_s1 = inlined_call_operand.vmem [shape: f32[1,5,1], index: 1, kind: output, shape index: {}]  }
   0x1   :  { %s12_s7 = sshll.u32 %s334_s6, 4  ;;  %s310_s10 = scalar_lea.hbm %s429_s0, 2560  ;;  %s13_s7 = int_to_ptr.vmem [resolvable:$true] %s12_s7 }
   0x2   :  { %p311_p0 = scmp.ne.s32.totalorder %s429_s0, %s310_s10  ;;  %p314_p1 = scmp.lt.u32.totalorder %s310_s10, %s429_s0 }
   0x4   :  { %p316_p2 = pnand %p314_p1, %p311_p0 }
   0x6   :  { %319 = shalt.err (!%p316_p2)
}
   0x7   :  { %s320_s15 = scalar_lea.vmem %s13_s7, 2560  ;;  %p325_p4 = scmp.lt.s32.totalorder %s13_s7, %s13_s7 }
   0x8   :  { %p321_p3 = scmp.ne.s32.totalorder %s13_s7, %s320_s15  ;;  %p326_p5 = scmp.lt.s32.totalorder %s320_s15, %s320_s15 }
   0xa   :  { %p327_p6 = por %p326_p5, %p325_p4 }
   0xc   :  { %p328_p7 = pnand %p327_p6, %p321_p3 }
   0xe   :  { %331 = shalt.err (!%p328_p7)
}
   0xf   :  { %s335_s16 = smov 128   ;;  %s336_s17 = smov 8  }
  0x10   :  { %18 = dma.hbm_to_vmem [thread:$0]  %s429_s0, 2560, %s13_s7, [#allocation3], %s335_s16, %s335_s16, %s336_s17  }
  0x11   :  { %332 = dma.done.wait [#allocation3], 2560  }
  0x12   :  { %333 = vsyncadd [#allocation3], 4294964736  ;;  %v359_v0 = vld [vmem:[#allocation2 + $0x20] sm:$0xff]  ;;  %v27_v2 = vld [vmem:[#allocation2 + $0x28] sm:$0xff]  ;;  %vm228_vm1 = vcmask 1041409   ;;  %vm230_vm2 = vcmask 1042434  }
  0x13   :  { %v22_v1 = vld [vmem:[#allocation2] sm:$0xff]  ;;  %50 = vadd.xlane.f32.xlu1 %v359_v0  ;;  %v23_v3 = vld [vmem:[#allocation2 + $0x8] sm:$0xff]  ;;  %v28_v6 = vld [vmem:[#allocation2 + $0x30] sm:$0xff]  ;;  %vm232_vm3 = vcmask 1043459   ;;  %vm234_vm5 = vcmask 1044484   ;;  %vm237_vm14 = vcmask 1044480  }
  0x14   :  { %42 = vadd.xlane.f32.xlu0 %v22_v1  ;;  %v362_v4 = vld [vmem:[#allocation2 + $0x48] sm:$0xff]  ;;  %v364_v5 = vld [vmem:[#allocation2 + $0x40] sm:$0xff]  ;;  %v24_v7 = vld [vmem:[#allocation2 + $0x10] sm:$0xff]  ;;  %vm288_vm15 = vcmask 4096  }
  0x15   :  { %v368_v8 = vld [vmem:[#allocation2 + $0x68] sm:$0xff]  ;;  %v370_v9 = vld [vmem:[#allocation2 + $0x60] sm:$0xff]  ;;  %v376_v11 = vld [vmem:[#allocation2 + $0x50] sm:$0xff] }
  0x16   :  { %v374_v10 = vld [vmem:[#allocation2 + $0x80] sm:$0xff]  ;;  %v25_v12 = vld [vmem:[#allocation2 + $0x18] sm:$0xff]  ;;  %v380_v13 = vld [vmem:[#allocation2 + $0x88] sm:$0xff] }
  0x17   :  { %52 = vadd.xlane.f32.xlu1 %v27_v2  ;;  %v383_v14 = vld [vmem:[#allocation2 + $0x70] sm:$0xff]  ;;  %v385_v15 = vld [vmem:[#allocation2 + $0x38] sm:$0xff] }
  0x18   :  { %44 = vadd.xlane.f32.xlu0 %v23_v3  ;;  %v389_v16 = vld [vmem:[#allocation2 + $0x90] sm:$0xff]  ;;  %v391_v17 = vld [vmem:[#allocation2 + $0x58] sm:$0xff] }
  0x19   :  { %v395_v18 = vld [vmem:[#allocation2 + $0x98] sm:$0xff] }
  0x1a   :  { %v397_v19 = vld [vmem:[#allocation2 + $0x78] sm:$0xff] }
  0x1b   :  { %60 = vadd.xlane.f32.xlu1 %v362_v4 }
  0x1c   :  { %58 = vadd.xlane.f32.xlu0 %v364_v5 }
  0x1f   :  { %54 = vadd.xlane.f32.xlu1 %v28_v6 }
  0x20   :  { %46 = vadd.xlane.f32.xlu0 %v24_v7 }
  0x23   :  { %68 = vadd.xlane.f32.xlu1 %v368_v8 }
  0x24   :  { %66 = vadd.xlane.f32.xlu0 %v370_v9 }
  0x27   :  { %74 = vadd.xlane.f32.xlu1 %v374_v10 }
  0x28   :  { %62 = vadd.xlane.f32.xlu0 %v376_v11 }
  0x2b   :  { %48 = vadd.xlane.f32.xlu1 %v25_v12 }
  0x2c   :  { %76 = vadd.xlane.f32.xlu0 %v380_v13 }
  0x2f   :  { %70 = vadd.xlane.f32.xlu1 %v383_v14 }
  0x30   :  { %56 = vadd.xlane.f32.xlu0 %v385_v15 }
  0x33   :  { %78 = vadd.xlane.f32.xlu1 %v389_v16 }
  0x34   :  { %64 = vadd.xlane.f32.xlu0 %v391_v17 }
  0x37   :  { %80 = vadd.xlane.f32.xlu1 %v395_v18 }
  0x38   :  { %72 = vadd.xlane.f32.xlu0 %v397_v19 }
  0xa0   :  { %v51_v20 = vpop.xlane.xlu1 %50 }
  0xa1   :  { %v43_v21 = vpop.xlane.xlu0 %42  ;;  %v87_v35 = vmul.f32 0.0078125, %v51_v20 }
  0xa2   :  { %v83_v31 = vmul.f32 0.0078125, %v43_v21 }
  0xa3   :  { %v107_v45 = vsub.f32 %v359_v0, %v87_v35 }
  0xa4   :  { %v53_v22 = vpop.xlane.xlu1 %52  ;;  %v103_v38 = vsub.f32 %v22_v1, %v83_v31 }
  0xa5   :  { %v45_v23 = vpop.xlane.xlu0 %44  ;;  %v88_v33 = vmul.f32 0.0078125, %v53_v22  ;;  %v127_v59 = vmul.f32 %v107_v45, %v107_v45 }
  0xa6   :  { %v84_v28 = vmul.f32 0.0078125, %v45_v23  ;;  %v123_v48 = vmul.f32 %v103_v38, %v103_v38 }
  0xa7   :  { %v108_v43 = vsub.f32 %v27_v2, %v88_v33 }
  0xa8   :  { %v61_v24 = vpop.xlane.xlu1 %60  ;;  %v104_v34 = vsub.f32 %v23_v3, %v84_v28 }
  0xa9   :  { %v59_v25 = vpop.xlane.xlu0 %58  ;;  %v92_v41 = vmul.f32 0.0078125, %v61_v24  ;;  %v128_v55 = vmul.f32 %v108_v43, %v108_v43 }
  0xaa   :  { %v91_v42 = vmul.f32 0.0078125, %v59_v25  ;;  %v124_v44 = vmul.f32 %v104_v34, %v104_v34 }
  0xab   :  { %v112_v52 = vsub.f32 %v362_v4, %v92_v41  ;;  %v152_v21 = vadd.f32 %v128_v55, %v127_v59 }
  0xac   :  { %v55_v26 = vpop.xlane.xlu1 %54  ;;  %v111_v53 = vsub.f32 %v364_v5, %v91_v42  ;;  %v143_v56 = vadd.f32 %v124_v44, %v123_v48 }
  0xad   :  { %v47_v27 = vpop.xlane.xlu0 %46  ;;  %v89_v39 = vmul.f32 0.0078125, %v55_v26 }
  0xae   :  { %v85_v32 = vmul.f32 0.0078125, %v47_v27  ;;  %v131_v20 = vmul.f32 %v111_v53, %v111_v53 }
  0xaf   :  { %v109_v49 = vsub.f32 %v28_v6, %v89_v39 }
  0xb0   :  { %v69_v29 = vpop.xlane.xlu1 %68  ;;  %v105_v40 = vsub.f32 %v24_v7, %v85_v32  ;;  %v132_v7 = vmul.f32 %v112_v52, %v112_v52 }
  0xb1   :  { %v67_v30 = vpop.xlane.xlu0 %66  ;;  %v96_v60 = vmul.f32 0.0078125, %v69_v29  ;;  %v129_v1 = vmul.f32 %v109_v49, %v109_v49 }
  0xb2   :  { %v125_v50 = vmul.f32 %v105_v40, %v105_v40  ;;  %v95_v61 = vmul.f32 0.0078125, %v67_v30 }
  0xb3   :  { %v116_v24 = vsub.f32 %v368_v8, %v96_v60  ;;  %v153_v29 = vadd.f32 %v152_v21, %v129_v1 }
  0xb4   :  { %v75_v36 = vpop.xlane.xlu1 %74  ;;  %v144_v2 = vadd.f32 %v143_v56, %v125_v50  ;;  %v115_v25 = vsub.f32 %v370_v9, %v95_v61 }
  0xb5   :  { %v63_v37 = vpop.xlane.xlu0 %62  ;;  %v99_v62 = vmul.f32 0.0078125, %v75_v36 }
  0xb6   :  { %v93_v54 = vmul.f32 0.0078125, %v63_v37  ;;  %v136_v37 = vmul.f32 %v116_v24, %v116_v24  ;;  %v135_v9 = vmul.f32 %v115_v25, %v115_v25 }
  0xb7   :  { %v119_v26 = vsub.f32 %v374_v10, %v99_v62 }
  0xb8   :  { %v49_v46 = vpop.xlane.xlu1 %48  ;;  %v113_v4 = vsub.f32 %v376_v11, %v93_v54  ;;  %v161_v11 = vadd.f32 %v132_v7, %v131_v20 }
  0xb9   :  { %v77_v47 = vpop.xlane.xlu0 %76  ;;  %v86_v51 = vmul.f32 0.0078125, %v49_v46  ;;  %v139_v38 = vmul.f32 %v119_v26, %v119_v26 }
  0xba   :  { %v100_v58 = vmul.f32 0.0078125, %v77_v47  ;;  %v133_v33 = vmul.f32 %v113_v4, %v113_v4 }
  0xbb   :  { %v106_v57 = vsub.f32 %v25_v12, %v86_v51  ;;  %v170_v51 = vadd.f32 %v136_v37, %v135_v9 }
  0xbc   :  { %v71_v63 = vpop.xlane.xlu1 %70  ;;  %v120_v12 = vsub.f32 %v380_v13, %v100_v58  ;;  %v162_v45 = vadd.f32 %v161_v11, %v133_v33 }
  0xbd   :  { %v57_v0 = vpop.xlane.xlu0 %56  ;;  %v126_v3 = vmul.f32 %v106_v57, %v106_v57  ;;  %v97_v5 = vmul.f32 0.0078125, %v71_v63 }
  0xbe   :  { %v90_v6 = vmul.f32 0.0078125, %v57_v0  ;;  %v140_v36 = vmul.f32 %v120_v12, %v120_v12 }
  0xbf   :  { %v145_v22 = vadd.f32 %v144_v2, %v126_v3  ;;  %v117_v34 = vsub.f32 %v383_v14, %v97_v5 }
  0xc0   :  { %v110_v23 = vsub.f32 %v385_v15, %v90_v6  ;;  %v79_v27 = vpop.xlane.xlu1 %78  ;;  %v179_v49 = vadd.f32 %v140_v36, %v139_v38 }
  0xc1   :  { %v65_v28 = vpop.xlane.xlu0 %64  ;;  %v146_v30 = vrot.slane %v145_v22, 4  ;;  %v101_v32 = vmul.f32 0.0078125, %v79_v27  ;;  %v137_v46 = vmul.f32 %v117_v34, %v117_v34 }
  0xc2   :  { %v130_v31 = vmul.f32 %v110_v23, %v110_v23  ;;  %v94_v35 = vmul.f32 0.0078125, %v65_v28 }
  0xc3   :  { %v147_v13 = vadd.f32 %v146_v30, %v145_v22  ;;  %v121_v8 = vsub.f32 %v389_v16, %v101_v32  ;;  %v171_v57 = vadd.f32 %v170_v51, %v137_v46 }
  0xc4   :  { %v154_v15 = vadd.f32 %v153_v29, %v130_v31  ;;  %v114_v10 = vsub.f32 %v391_v17, %v94_v35  ;;  %v81_v39 = vpop.xlane.xlu1 %80 }
  0xc5   :  { %v73_v40 = vpop.xlane.xlu0 %72  ;;  %v148_v41 = vrot.slane %v147_v13, 2  ;;  %v141_v43 = vmul.f32 %v121_v8, %v121_v8  ;;  %v102_v44 = vmul.f32 0.0078125, %v81_v39 }
  0xc6   :  { %v155_v42 = vrot.slane %v154_v15, 4  ;;  %v134_v14 = vmul.f32 %v114_v10, %v114_v10  ;;  %v98_v47 = vmul.f32 0.0078125, %v73_v40 }
  0xc7   :  { %v149_v48 = vadd.f32 %v148_v41, %v147_v13  ;;  %v122_v16 = vsub.f32 %v395_v18, %v102_v44  ;;  %v180_v54 = vadd.f32 %v179_v49, %v141_v43 }
  0xc8   :  { %v156_v50 = vadd.f32 %v155_v42, %v154_v15  ;;  %v163_v52 = vadd.f32 %v162_v45, %v134_v14  ;;  %v118_v53 = vsub.f32 %v397_v19, %v98_v47 }
  0xc9   :  { %v142_v55 = vmul.f32 %v122_v16, %v122_v16  ;;  %v150_v56 = vrot.slane %v149_v48, 1 }
  0xca   :  { %v157_v17 = vrot.slane %v156_v50, 2  ;;  %v164_v58 = vrot.slane %v163_v52, 4  ;;  %v138_v59 = vmul.f32 %v118_v53, %v118_v53 }
  0xcb   :  { %v181_v61 = vadd.f32 %v180_v54, %v142_v55  ;;  %v151_v2 = vadd.f32 %v150_v56, %v149_v48 }
  0xcc   :  { %v158_v60 = vadd.f32 %v157_v17, %v156_v50  ;;  %v165_v62 = vadd.f32 %v164_v58, %v163_v52  ;;  %v172_v63 = vadd.f32 %v171_v57, %v138_v59 }
  0xcd   :  { %v182_v1 = vrot.slane %v181_v61, 4  ;;  %vm190_vm4 = vcmp.eq.f32.partialorder %v151_v2, inf  ;;  %vm192_vm6 = vcmp.eq.f32.partialorder %v151_v2, 0.0  ;;  %v193_v34 = vand.u32 2147483648, %v151_v2 }
  0xce   :  { %v159_v0 = vrot.slane %v158_v60, 1  ;;  %v166_v3 = vrot.slane %v165_v62, 2  ;;  %v173_v18 = vrot.slane %v172_v63, 4 }
  0xcf   :  { %v183_v7 = vadd.f32 %v182_v1, %v181_v61 }
  0xd0   :  { %v160_v6 = vadd.f32 %v159_v0, %v158_v60  ;;  %v167_v20 = vadd.f32 %v166_v3, %v165_v62  ;;  %v174_v19 = vadd.f32 %v173_v18, %v172_v63 }
  0xd1   :  { %v184_v4 = vrot.slane %v183_v7, 2 }
  0xd2   :  { %298 = vrsqrt.f32 %v160_v6  ;;  %v168_v5 = vrot.slane %v167_v20, 1  ;;  %v175_v21 = vrot.slane %v174_v19, 2  ;;  %vm197_vm0 = vcmp.eq.f32.partialorder %v160_v6, inf }
  0xd3   :  { %300 = vrsqrt.f32 %v151_v2  ;;  %v185_v22 = vadd.f32 %v184_v4, %v183_v7  ;;  %v200_v35 = vand.u32 2147483648, %v160_v6  ;;  %vm199_vm8 = vcmp.eq.f32.partialorder %v160_v6, 0.0 }
  0xd4   :  { %v169_v12 = vadd.f32 %v168_v5, %v167_v20  ;;  %v176_v23 = vadd.f32 %v175_v21, %v174_v19 }
  0xd5   :  { %v186_v24 = vrot.slane %v185_v22, 1 }
  0xd6   :  { %v177_v25 = vrot.slane %v176_v23, 1  ;;  %302 = vrsqrt.f32 %v169_v12  ;;  %vm204_vm7 = vcmp.eq.f32.partialorder %v169_v12, inf  ;;  %v207_v8 = vand.u32 2147483648, %v169_v12 }
  0xd7   :  { %v187_v26 = vadd.f32 %v186_v24, %v185_v22  ;;  %vm206_vm9 = vcmp.eq.f32.partialorder %v169_v12, 0.0 }
  0xd8   :  { %v178_v27 = vadd.f32 %v177_v25, %v176_v23 }
  0xd9   :  { %304 = vrsqrt.f32 %v187_v26  ;;  %vm218_vm10 = vcmp.eq.f32.partialorder %v187_v26, inf  ;;  %vm220_vm11 = vcmp.eq.f32.partialorder %v187_v26, 0.0  ;;  %v221_v40 = vand.u32 2147483648, %v187_v26 }
  0xda   :  { %306 = vrsqrt.f32 %v178_v27  ;;  %vm211_vm12 = vcmp.eq.f32.partialorder %v178_v27, inf  ;;  %v214_v42 = vand.u32 2147483648, %v178_v27  ;;  %vm213_vm13 = vcmp.eq.f32.partialorder %v178_v27, 0.0 }
  0xdc   :  { %v299_v28 = vpop.eup %298 }
  0xdd   :  { %v301_v29 = vpop.eup %300  ;;  %v196_v30 = vmul.f32 %v299_v28, %v160_v6 }
  0xde   :  { %v189_v31 = vmul.f32 %v301_v29, %v151_v2 }
  0xdf   :  { %v198_v11 = vsel %vm197_vm0, %v160_v6, %v196_v30 }
  0xe0   :  { %v303_v32 = vpop.eup %302  ;;  %v191_v36 = vsel %vm190_vm4, %v151_v2, %v189_v31  ;;  %v201_v9 = vsel %vm199_vm8, %v200_v35, %v198_v11 }
  0xe1   :  { %v203_v33 = vmul.f32 %v303_v32, %v169_v12  ;;  %v194_v41 = vsel %vm192_vm6, %v193_v34, %v191_v36 }
  0xe2   :  { %v229_v46 = vsel %vm228_vm1, %v201_v9, %v194_v41 }
  0xe3   :  { %v305_v13 = vpop.eup %304  ;;  %v205_v15 = vsel %vm204_vm7, %v169_v12, %v203_v33 }
  0xe4   :  { %v307_v37 = vpop.eup %306  ;;  %v217_v38 = vmul.f32 %v305_v13, %v187_v26  ;;  %v208_v10 = vsel %vm206_vm9, %v207_v8, %v205_v15 }
  0xe5   :  { %v210_v39 = vmul.f32 %v307_v37, %v178_v27  ;;  %v231_v47 = vsel %vm230_vm2, %v208_v10, %v229_v46 }
  0xe6   :  { %v219_v43 = vsel %vm218_vm10, %v187_v26, %v217_v38 }
  0xe7   :  { %v212_v44 = vsel %vm211_vm12, %v178_v27, %v210_v39  ;;  %v222_v45 = vsel %vm220_vm11, %v221_v40, %v219_v43 }
  0xe8   :  { %v215_v14 = vsel %vm213_vm13, %v214_v42, %v212_v44 }
  0xe9   :  { %v233_v48 = vsel %vm232_vm3, %v215_v14, %v231_v47 }
  0xea   :  { %v235_v49 = vsel %vm234_vm5, %v222_v45, %v233_v48 }
  0xeb   :  { %v238_v50 = vsel %vm237_vm14, %v235_v49, 0.0 }
  0xec   :  { %239 = vadd.xlane.f32.xlu0 %v238_v50 }
 0x179   :  { %v240_v16 = vpop.xlane.xlu0 %239 }
 0x17a   :  { %v241_v51 = vmul.f32 0.0078125, %v240_v16 }
 0x17c   :  { %v243_v52 = vrot.slane %v241_v51, 1  ;;  %v244_v53 = vrot.slane %v241_v51, 2  ;;  %v245_v17 = vrot.slane %v241_v51, 3  ;;  %v246_v54 = vrot.slane %v241_v51, 4 }
 0x17d   :  { %v252_v55 = vsub.f32 %v194_v41, %v241_v51 }
 0x17e   :  { %v253_v56 = vsub.f32 %v201_v9, %v243_v52  ;;  %v254_v57 = vsub.f32 %v208_v10, %v244_v53  ;;  %v255_v58 = vsub.f32 %v215_v14, %v245_v17  ;;  %v256_v59 = vsub.f32 %v222_v45, %v246_v54 }
 0x17f   :  { %v257_v0 = vmul.f32 %v252_v55, %v252_v55 }
 0x180   :  { %v258_v60 = vmul.f32 %v253_v56, %v253_v56  ;;  %v259_v61 = vmul.f32 %v254_v57, %v254_v57  ;;  %v260_v62 = vmul.f32 %v255_v58, %v255_v58  ;;  %v261_v63 = vmul.f32 %v256_v59, %v256_v59 }
 0x182   :  { %v267_v1 = vrot.slane %v258_v60, 7  ;;  %v269_v2 = vrot.slane %v259_v61, 6  ;;  %v271_v18 = vrot.slane %v260_v62, 5  ;;  %v273_v7 = vrot.slane %v261_v63, 4 }
 0x184   :  { %v268_v3 = vsel %vm228_vm1, %v267_v1, %v257_v0 }
 0x185   :  { %v270_v6 = vsel %vm230_vm2, %v269_v2, %v268_v3 }
 0x186   :  { %v272_v20 = vsel %vm232_vm3, %v271_v18, %v270_v6 }
 0x187   :  { %v274_v19 = vsel %vm234_vm5, %v273_v7, %v272_v20 }
 0x188   :  { %v276_v4 = vsel %vm237_vm14, %v274_v19, 0.0 }
 0x189   :  { %277 = vadd.xlane.f32.xlu1 %v276_v4 }
 0x216   :  { %v278_v5 = vpop.xlane.xlu1 %277 }
 0x217   :  { %v280_v21 = vmul.f32 0.007874016, %v278_v5 }
 0x219   :  { %308 = vrsqrt.f32 %v280_v21  ;;  %vm283_vm0 = vcmp.eq.f32.partialorder %v280_v21, inf  ;;  %v286_v23 = vand.u32 2147483648, %v280_v21  ;;  %vm285_vm1 = vcmp.eq.f32.partialorder %v280_v21, 0.0 }
 0x223   :  { %v309_v22 = vpop.eup %308 }
 0x224   :  { %v282_v12 = vmul.f32 %v309_v22, %v280_v21 }
 0x226   :  { %v284_v24 = vsel %vm283_vm0, %v280_v21, %v282_v12 }
 0x227   :  { %v287_v25 = vsel %vm285_vm1, %v286_v23, %v284_v24 }
 0x228   :  { %289 = vst.msk [vmem:[%s430_s1] sm:$0x1f] %vm288_vm15, %v287_v25 }
 0x229   :  { %294 = vsyncpa [#allocation3], 1 }

</bundles_post_ra>
